<compile_context>
chip_gen: v5e
topology: v5e:2x2
jax: 0.10.0
libtpu: 0.0.40
codegen_flags: <defaults>
</compile_context>

<pallas_src>
import functools

import jax
import jax.numpy as jnp
from jax.experimental import pallas as pl
from jax.experimental.pallas import tpu as pltpu

SUBLANE = 8
WIDTH = 512  # lane-dense last dim (multiple of 128 -> unmasked vst path)


def _round_up(x, m):
    return ((x + m - 1) // m) * m


def _cleaky_relu_kernel(ns_ref, re_ref, im_ref, ore_ref, oim_ref):
    ns = ns_ref[0]                      # scalar read from SMEM
    re = re_ref[...]
    im = im_ref[...]
    ore_ref[...] = jnp.where(re >= 0, re, ns * re)
    oim_ref[...] = jnp.where(im >= 0, im, ns * im)


@functools.partial(jax.jit, static_argnames=("block_rows",))
def cleaky_relu(z, negative_slope=0.01, block_rows=512):
    """Complex LeakyReLU. `z` is a complex array of arbitrary shape."""
    if z.dtype != jnp.complex64:
        # TODO(synk): complex128 inputs are downcast to complex64 (f32 math).
        z = z.astype(jnp.complex64)
    orig_shape = z.shape

    re = jnp.real(z).reshape(-1)
    im = jnp.imag(z).reshape(-1)
    n = re.size

    # Pad only the sub-(8, 512) tail (<= 16 KiB), never a full tile / tensor.
    n_pad = _round_up(n, SUBLANE * WIDTH)
    pad = n_pad - n
    if pad:
        re = jnp.pad(re, (0, pad))      # zeros pass through leaky_relu unchanged
        im = jnp.pad(im, (0, pad))
    rows = n_pad // WIDTH
    re_slab = re.reshape(rows, WIDTH)
    im_slab = im.reshape(rows, WIDTH)

    # Tile sizing: <= block_rows (default 512 rows = 1 MiB/block/array); aim
    # for >= 4 grid steps when there is enough work so both v7x TensorCores
    # get >= 2 pipelined blocks each.
    block_rows = max(SUBLANE, _round_up(block_rows, SUBLANE))
    tile_rows = min(block_rows, rows)
    if rows >= 4 * SUBLANE:
        tile_rows = min(tile_rows, _round_up(pl.cdiv(rows, 4), SUBLANE))
    grid = (pl.cdiv(rows, tile_rows),)

    ns_arr = jnp.asarray(negative_slope, dtype=jnp.float32).reshape(1)

    slab_spec = pl.BlockSpec((tile_rows, WIDTH), lambda i: (i, 0))
    out_re, out_im = pl.pallas_call(
        _cleaky_relu_kernel,
        out_shape=(
            jax.ShapeDtypeStruct((rows, WIDTH), jnp.float32),
            jax.ShapeDtypeStruct((rows, WIDTH), jnp.float32),
        ),
        grid=grid,
        in_specs=[
            pl.BlockSpec(memory_space=pltpu.MemorySpace.SMEM),  # negative_slope
            slab_spec,
            slab_spec,
        ],
        out_specs=(slab_spec, slab_spec),
        compiler_params=pltpu.CompilerParams(
            dimension_semantics=("parallel",),
        ),
        input_output_aliases={1: 0, 2: 1},
    )(ns_arr, re_slab, im_slab)

    if pad:
        out_re = out_re.reshape(-1)[:n]
        out_im = out_im.reshape(-1)[:n]
    out_re = out_re.reshape(orig_shape)
    out_im = out_im.reshape(orig_shape)
    return jax.lax.complex(out_re, out_im)


if __name__ == "__main__":
    key = jax.random.PRNGKey(0)
    k_re, k_im = jax.random.split(key)
    shape = (2, 4, 16, 16)  # NCHW-like complex input
    z = jax.lax.complex(
        jax.random.normal(k_re, shape, dtype=jnp.float32),
        jax.random.normal(k_im, shape, dtype=jnp.float32),
    )

    negative_slope = 0.01
    out = jax.block_until_ready(cleaky_relu(z, negative_slope))

    # Reference check in plain JAX.
    def ref_leaky(x):
        return jnp.where(x >= 0, x, negative_slope * x)

    ref = jax.lax.complex(ref_leaky(jnp.real(z)), ref_leaky(jnp.imag(z)))
    assert out.shape == shape and out.dtype == jnp.complex64
    assert jnp.allclose(out, ref, atol=1e-6), "mismatch vs reference"

    # A second, odd-sized shape to exercise tail padding + multi-step grid.
    shape2 = (3, 5, 33, 17)
    k2_re, k2_im = jax.random.split(jax.random.PRNGKey(1))
    z2 = jax.lax.complex(
        jax.random.normal(k2_re, shape2, dtype=jnp.float32),
        jax.random.normal(k2_im, shape2, dtype=jnp.float32),
    )
    out2 = jax.block_until_ready(cleaky_relu(z2, negative_slope, block_rows=16))
    ref2 = jax.lax.complex(ref_leaky(jnp.real(z2)), ref_leaky(jnp.imag(z2)))
    assert jnp.allclose(out2, ref2, atol=1e-6), "mismatch vs reference (shape2)"

    print("KERNEL_OK")
</pallas_src>

<mosaic_0001>
module attributes {stable_mosaic.version = 11 : i64} {
  func.func @_cleaky_relu_kernel(%arg0: i32, %arg1: memref<1xf32, #tpu.memory_space<smem>>, %arg2: memref<8x512xf32, #tpu.memory_space<vmem>>, %arg3: memref<8x512xf32, #tpu.memory_space<vmem>>, %arg4: memref<8x512xf32, #tpu.memory_space<vmem>>, %arg5: memref<8x512xf32, #tpu.memory_space<vmem>>) attributes {dimension_semantics = [#tpu.dimension_semantics<parallel>], iteration_bounds = array<i64: 1>, scalar_prefetch = 0 : i64, scratch_operands = 0 : i64, tpu.core_type = #tpu.core_type<tc>, window_params = [{transform_indices = @transform_0, window_bounds = array<i64: 1>}, {transform_indices = @transform_1, window_bounds = array<i64: 8, 512>}, {transform_indices = @transform_2, window_bounds = array<i64: 8, 512>}, {transform_indices = @transform_3, window_bounds = array<i64: 8, 512>}, {transform_indices = @transform_4, window_bounds = array<i64: 8, 512>}]} {
    %c0 = arith.constant 0 : index
    %0 = memref.load %arg1[%c0] : memref<1xf32, #tpu.memory_space<smem>>
    %c0_0 = arith.constant 0 : index
    %c0_1 = arith.constant 0 : index
    %1 = vector.load %arg2[%c0_0, %c0_1] : memref<8x512xf32, #tpu.memory_space<vmem>>, vector<8x512xf32>
    %c0_2 = arith.constant 0 : index
    %c0_3 = arith.constant 0 : index
    %2 = vector.load %arg3[%c0_2, %c0_3] : memref<8x512xf32, #tpu.memory_space<vmem>>, vector<8x512xf32>
    %cst = arith.constant 0.000000e+00 : f32
    %3 = vector.broadcast %cst : f32 to vector<8x512xf32>
    %4 = arith.cmpf oge, %1, %3 : vector<8x512xf32>
    %5 = vector.broadcast %0 : f32 to vector<8x512xf32>
    %6 = arith.mulf %5, %1 : vector<8x512xf32>
    %7 = arith.select %4, %1, %6 : vector<8x512xi1>, vector<8x512xf32>
    %c0_4 = arith.constant 0 : index
    %c0_5 = arith.constant 0 : index
    %8 = vector.load %arg4[%c0_4, %c0_5] : memref<8x512xf32, #tpu.memory_space<vmem>>, vector<8x512xf32>
    tpu.vector_store %arg4[%c0_4, %c0_5], %7 {strides = array<i32>} : memref<8x512xf32, #tpu.memory_space<vmem>>, vector<8x512xf32>,
    %cst_6 = arith.constant 0.000000e+00 : f32
    %9 = vector.broadcast %cst_6 : f32 to vector<8x512xf32>
    %10 = arith.cmpf oge, %2, %9 : vector<8x512xf32>
    %11 = vector.broadcast %0 : f32 to vector<8x512xf32>
    %12 = arith.mulf %11, %2 : vector<8x512xf32>
    %13 = arith.select %10, %2, %12 : vector<8x512xi1>, vector<8x512xf32>
    %c0_7 = arith.constant 0 : index
    %c0_8 = arith.constant 0 : index
    %14 = vector.load %arg5[%c0_7, %c0_8] : memref<8x512xf32, #tpu.memory_space<vmem>>, vector<8x512xf32>
    tpu.vector_store %arg5[%c0_7, %c0_8], %13 {strides = array<i32>} : memref<8x512xf32, #tpu.memory_space<vmem>>, vector<8x512xf32>,
    return
  }
  func.func @transform_0(%arg0: i32) -> i32 {
    %c0_i32 = arith.constant 0 : i32
    %c0_i32_0 = arith.constant 0 : i32
    return %c0_i32 : i32
  }
  func.func @transform_1(%arg0: i32) -> (i32, i32) {
    %c0_i32 = arith.constant 0 : i32
    %c0_i32_0 = arith.constant 0 : i32
    return %arg0, %c0_i32 : i32, i32
  }
  func.func @transform_2(%arg0: i32) -> (i32, i32) {
    %c0_i32 = arith.constant 0 : i32
    %c0_i32_0 = arith.constant 0 : i32
    return %arg0, %c0_i32 : i32, i32
  }
  func.func @transform_3(%arg0: i32) -> (i32, i32) {
    %c0_i32 = arith.constant 0 : i32
    %c0_i32_0 = arith.constant 0 : i32
    return %arg0, %c0_i32 : i32, i32
  }
  func.func @transform_4(%arg0: i32) -> (i32, i32) {
    %c0_i32 = arith.constant 0 : i32
    %c0_i32_0 = arith.constant 0 : i32
    return %arg0, %c0_i32 : i32, i32
  }
}

</mosaic_0001>

<bundles_post_ra>
// kernel: custom-call.1
= control target key start
LH: loop header
LB: loop body
LE: loop exit
PB: predicated region body
PF: predicated region fallthrough
CT: control target
= control target key end

     0   :  { %s56_s0 = inlined_call_operand.hbm [shape: c64[2,4,16,16], index: 0, kind: input, shape index: {}]   ;;  %s57_s1 = inlined_call_operand.vmem [shape: f32[2,4,16,16], index: 1, kind: output, shape index: {}]  }
   0x1   :  { %s2_s8 = scalar_lea.hbm %s56_s0, 128 }
   0x2   :  { %3 = vsyncpa [#allocation0], 0  ;;  %s5_s9 = sshll.u32 %s2_s8, 4  ;;  %s7_s12 = sshll.u32 %s57_s1, 4  ;;  %s6_s9 = int_to_ptr.hbm [resolvable:$true] %s5_s9  ;;  %s8_s12 = int_to_ptr.vmem [resolvable:$true] %s7_s12 }
   0x3   :  { %10 = dma.hbm_to_vmem [thread:$0]  %s6_s9, 2048, %s8_s12, [#allocation0] }
   0x4   :  { %38 = dma.done.wait [#allocation0], 2048  }
   0x5   :  { %39 = vsyncadd [#allocation0], 4294965248 }
   0x6   :  { %13 = vsyncpa [#allocation0], 1 }

// kernel: custom-call
= control target key start
LH: loop header
LB: loop body
LE: loop exit
PB: predicated region body
PF: predicated region fallthrough
CT: control target
= control target key end

     0   :  { %2 = vsyncpa [#allocation0], 0  ;;  %s55_s0 = inlined_call_operand.hbm [shape: c64[2,4,16,16], index: 0, kind: input, shape index: {}]   ;;  %s56_s1 = inlined_call_operand.vmem [shape: f32[2,4,16,16], index: 1, kind: output, shape index: {}]  }
   0x1   :  { %s4_s8 = sshll.u32 %s55_s0, 4  ;;  %s6_s11 = sshll.u32 %s56_s1, 4  ;;  %s5_s8 = int_to_ptr.hbm [resolvable:$true] %s4_s8  ;;  %s7_s11 = int_to_ptr.vmem [resolvable:$true] %s6_s11 }
   0x2   :  { %9 = dma.hbm_to_vmem [thread:$0]  %s5_s8, 2048, %s7_s11, [#allocation0] }
   0x3   :  { %37 = dma.done.wait [#allocation0], 2048  }
   0x4   :  { %38 = vsyncadd [#allocation0], 4294965248 }
   0x5   :  { %12 = vsyncpa [#allocation0], 1 }

// kernel: custom-call.2
= control target key start
LH: loop header
LB: loop body
LE: loop exit
PB: predicated region body
PF: predicated region fallthrough
CT: control target
= control target key end

     0   :  { %s105_s0 = inlined_call_operand.vmem [shape: f32[2,4,16,16], index: 0, kind: input, shape index: {}]   ;;  %s106_s1 = inlined_call_operand.vmem [shape: f32[2,4,16,16], index: 1, kind: input, shape index: {}]   ;;  %s107_s2 = inlined_call_operand.hbm [shape: c64[2,4,16,16], index: 2, kind: output, shape index: {}]  }
   0x1   :  { %s3_s11 = scalar_lea.hbm %s107_s2, 128 }
   0x2   :  { %4 = vsyncpa [#allocation0], 0  ;;  %s6_s14 = sshll.u32 %s105_s0, 4  ;;  %s8_s17 = sshll.u32 %s107_s2, 4  ;;  %s7_s14 = int_to_ptr.vmem [resolvable:$true] %s6_s14  ;;  %s9_s17 = int_to_ptr.hbm [resolvable:$true] %s8_s17 }
   0x3   :  { %11 = dma.vmem_to_hbm [thread:$0]  %s7_s14, 2048, %s9_s17, [#allocation0] }
   0x4   :  { %74 = dma.done.wait [#allocation0], 2048  }
   0x5   :  { %75 = vsyncadd [#allocation0], 4294965248 }
   0x6   :  { %14 = vsyncpa [#allocation0], 1 }
   0x7   :  { %15 = vsyncpa [#allocation1], 0  ;;  %s17_s20 = sshll.u32 %s106_s1, 4  ;;  %s19_s21 = sshll.u32 %s3_s11, 4  ;;  %s18_s20 = int_to_ptr.vmem [resolvable:$true] %s17_s20  ;;  %s20_s21 = int_to_ptr.hbm [resolvable:$true] %s19_s21 }
   0x8   :  { %22 = dma.vmem_to_hbm [thread:$0]  %s18_s20, 2048, %s20_s21, [#allocation1] }
   0x9   :  { %76 = dma.done.wait [#allocation1], 2048  }
   0xa   :  { %77 = vsyncadd [#allocation1], 4294965248 }
   0xb   :  { %25 = vsyncpa [#allocation1], 1 }

// kernel: cleaky_relu.1
= control target key start
LH: loop header
LB: loop body
LE: loop exit
PB: predicated region body
PF: predicated region fallthrough
CT: control target
= control target key end

     0   :  { %s143_s0 = inlined_call_operand.<no memory space> [shape: f32[1], index: 0, kind: input, shape index: {}]   ;;  %s144_s1 = inlined_call_operand.vmem [shape: f32[8,512], index: 1, kind: input, shape index: {}, may-alias: {1,3}]   ;;  %s145_s2 = inlined_call_operand.vmem [shape: f32[8,512], index: 2, kind: input, shape index: {}, may-alias: {2,4}]   ;;  %s146_s3 = inlined_call_operand.vmem [shape: f32[8,512], index: 3, kind: output, shape index: {0}, may-alias: {1,3}]   ;;  %s147_s4 = inlined_call_operand.vmem [shape: f32[8,512], index: 4, kind: output, shape index: {1}, may-alias: {2,4}]  }
   0x1   :  { %v18_v0 = vld [vmem:[%s144_s1] sm:$0xff]  ;;  %v30_v1 = vstv %s143_s0  ;;  %v19_v2 = vld [vmem:[%s144_s1 + $0x8] sm:$0xff]  ;;  %v20_v3 = vld [vmem:[%s144_s1 + $0x10] sm:$0xff] }
   0x2   :  { %vm26_vm0 = vcmp.ge.f32.partialorder %v18_v0, 0.0  ;;  %v31_v4 = vmul.f32 %v30_v1, %v18_v0  ;;  %vm27_vm1 = vcmp.ge.f32.partialorder %v19_v2, 0.0  ;;  %v32_v5 = vmul.f32 %v30_v1, %v19_v2  ;;  %v21_v6 = vld [vmem:[%s144_s1 + $0x18] sm:$0xff]  ;;  %v22_v7 = vld [vmem:[%s145_s2] sm:$0xff]  ;;  %v23_v8 = vld [vmem:[%s145_s2 + $0x8] sm:$0xff] }
   0x3   :  { %vm28_vm2 = vcmp.ge.f32.partialorder %v20_v3, 0.0  ;;  %v33_v9 = vmul.f32 %v30_v1, %v20_v3  ;;  %vm29_vm3 = vcmp.ge.f32.partialorder %v21_v6, 0.0  ;;  %v34_v10 = vmul.f32 %v30_v1, %v21_v6  ;;  %v24_v11 = vld [vmem:[%s145_s2 + $0x10] sm:$0xff]  ;;  %v25_v12 = vld [vmem:[%s145_s2 + $0x18] sm:$0xff] }
   0x4   :  { %v35_v13 = vsel %vm26_vm0, %v18_v0, %v31_v4  ;;  %v36_v14 = vsel %vm27_vm1, %v19_v2, %v32_v5  ;;  %vm43_vm4 = vcmp.ge.f32.partialorder %v22_v7, 0.0  ;;  %v47_v15 = vmul.f32 %v30_v1, %v22_v7 }
   0x5   :  { %39 = vst [vmem:[%s146_s3] sm:$0xff] %v35_v13  ;;  %v37_v16 = vsel %vm28_vm2, %v20_v3, %v33_v9  ;;  %v38_v17 = vsel %vm29_vm3, %v21_v6, %v34_v10  ;;  %vm44_vm5 = vcmp.ge.f32.partialorder %v23_v8, 0.0  ;;  %v48_v18 = vmul.f32 %v30_v1, %v23_v8 }
   0x6   :  { %40 = vst [vmem:[%s146_s3 + $0x8] sm:$0xff] %v36_v14  ;;  %v51_v19 = vsel %vm43_vm4, %v22_v7, %v47_v15  ;;  %vm45_vm6 = vcmp.ge.f32.partialorder %v24_v11, 0.0  ;;  %v49_v20 = vmul.f32 %v30_v1, %v24_v11  ;;  %vm46_vm7 = vcmp.ge.f32.partialorder %v25_v12, 0.0 }
   0x7   :  { %41 = vst [vmem:[%s146_s3 + $0x10] sm:$0xff] %v37_v16  ;;  %v52_v21 = vsel %vm44_vm5, %v23_v8, %v48_v18  ;;  %v50_v22 = vmul.f32 %v30_v1, %v25_v12 }
   0x8   :  { %42 = vst [vmem:[%s146_s3 + $0x18] sm:$0xff] %v38_v17  ;;  %v53_v23 = vsel %vm45_vm6, %v24_v11, %v49_v20 }
   0x9   :  { %55 = vst [vmem:[%s147_s4] sm:$0xff] %v51_v19  ;;  %v54_v24 = vsel %vm46_vm7, %v25_v12, %v50_v22 }
   0xa   :  { %56 = vst [vmem:[%s147_s4 + $0x8] sm:$0xff] %v52_v21 }
   0xb   :  { %57 = vst [vmem:[%s147_s4 + $0x10] sm:$0xff] %v53_v23 }
   0xc   :  { %58 = vst [vmem:[%s147_s4 + $0x18] sm:$0xff] %v54_v24 }

</bundles_post_ra>
